<compile_context>
chip_gen: v5e
topology: v5e:2x2
jax: 0.10.0
libtpu: 0.0.40
codegen_flags: <defaults>
</compile_context>

<pallas_src>
import functools
import math

import jax
import jax.numpy as jnp
import numpy as np
from jax.experimental import pallas as pl
from jax.experimental.pallas import tpu as pltpu


def _round_up(v, m):
    return ((v + m - 1) // m) * m


# ---------------------------------------------------------------------------
# Kernel
# ---------------------------------------------------------------------------
def _osg_decoder_kernel(x_ref, w_ref, b_ref, rgb_ref, sigma_ref, *,
                        n_groups, rgb_width, compute_dtype):
    """One packed-row tile of the fused OSGDecoder forward.

    x_ref:     (TM, L)   L = G*D lanes; group g holds original row tile*G+g
    w_ref:     (7, L, L) gain-folded, lane-packed weights (compute dtype)
    b_ref:     (7, 1, L) lane-packed biases (f32)
    rgb_ref:   (TM, 3*G) group-major rgb
    sigma_ref: (TM, G)   sigma of group g at lane g
    """
    cdt = compute_dtype

    def fc(h, i):
        # bf16 x bf16 MXU matmul, f32 accumulation, f32 bias add.
        return jnp.dot(h, w_ref[i], preferred_element_type=jnp.float32) + b_ref[i]

    def relu_cast(a):
        # ReLU in f32 (portable to v5e), store activation in bf16 — the cast
        # is needed for the next MXU dot anyway and halves live vregs.
        return jnp.maximum(a, 0.0).astype(cdt)

    x = x_ref[...].astype(cdt)

    # sigma_net: FC -> ReLU -> FC -> ReLU -> FC
    h = relu_cast(fc(x, 0))
    h = relu_cast(fc(h, 1))
    h2 = fc(h, 2)                      # f32; lanes [0, G) = sigma (custom layout)
    sigma_ref[...] = h2[:, :n_groups].astype(sigma_ref.dtype)

    # color_net: FC -> ReLU -> FC -> ReLU -> FC -> ReLU -> FC
    # w_ref[3] has zero rows at the sigma lanes (by construction + asserted in
    # the packer), so the full h2 can be fed in directly.
    c = relu_cast(fc(h2.astype(cdt), 3))
    c = relu_cast(fc(c, 4))
    c = relu_cast(fc(c, 5))
    c = fc(c, 6)                       # f32; lanes [0, 3*G) = group-major rgb
    rgb = jax.nn.sigmoid(c[:, :rgb_width]) * (1.0 + 2.0 * 0.001) - 0.001
    rgb_ref[...] = rgb.astype(rgb_ref.dtype)


# ---------------------------------------------------------------------------
# Parameter construction (mirrors FullyConnectedLayer.__init__)
# ---------------------------------------------------------------------------
def _make_fc_params(key, in_features, out_features):
    # weight = randn([out, in]) / lr_multiplier   (lr_multiplier = 1)
    w = jax.random.normal(key, (out_features, in_features), dtype=jnp.float32)
    b = jnp.zeros((1, out_features), dtype=jnp.float32)   # bias_init = 0
    gain = 1.0 / math.sqrt(in_features)                   # weight_gain
    return w, b, gain


def make_osg_decoder_params(key, n_features, hidden_dim,
                            decoder_output_dim, decoder_geofeat_dim):
    dims_sigma = [(n_features, hidden_dim),
                  (hidden_dim, hidden_dim),
                  (hidden_dim, decoder_geofeat_dim + 1)]
    dims_color = [(decoder_geofeat_dim, hidden_dim),
                  (hidden_dim, hidden_dim),
                  (hidden_dim, hidden_dim),
                  (hidden_dim, decoder_output_dim)]
    keys = jax.random.split(key, len(dims_sigma) + len(dims_color))
    sigma_layers = [_make_fc_params(k, i, o)
                    for k, (i, o) in zip(keys[:3], dims_sigma)]
    color_layers = [_make_fc_params(k, i, o)
                    for k, (i, o) in zip(keys[3:], dims_color)]
    return sigma_layers, color_layers


# ---------------------------------------------------------------------------
# One-time weight packing (hoisted out of the forward)
# ---------------------------------------------------------------------------
def pack_osg_decoder_params(sigma_layers, color_layers, n_features, hidden_dim,
                            decoder_output_dim, decoder_geofeat_dim,
                            *, compute_dtype=jnp.bfloat16):
    """Fold weight_gain, transpose, and lane-pack G rows per 128-lane vector.

    Returns (w_all (7,L,L) compute_dtype, b_all (7,1,L) f32, meta dict).
    """
    layers = list(sigma_layers) + list(color_layers)
    assert len(layers) == 7
    gf, od, hd = decoder_geofeat_dim, decoder_output_dim, hidden_dim
    D = max(n_features, hd, gf + 1, od)
    G = max(1, 128 // D)
    L = G * D
    assert G * (gf + 1) <= L  # custom sigma/geo layout fits in L lanes

    w_np = [np.asarray(w, np.float32).T * np.float32(g) for w, _, g in layers]
    b_np = [np.asarray(b, np.float32).reshape(-1) for _, b, _ in layers]

    w_all = np.zeros((7, L, L), dtype=np.float32)
    b_all = np.zeros((7, 1, L), dtype=np.float32)

    def block_diag(idx, in_dim, out_dim_):
        for g in range(G):
            w_all[idx, D * g:D * g + in_dim, D * g:D * g + out_dim_] = w_np[idx]
            b_all[idx, 0, D * g:D * g + out_dim_] = b_np[idx]

    # Hidden layers: plain kron(I_G, W)-style block diagonal.
    block_diag(0, n_features, hd)
    block_diag(1, hd, hd)
    block_diag(4, hd, hd)
    block_diag(5, hd, hd)

    # sigma_net output layer: sigma of group g -> lane g (contiguous [0, G)),
    # geo feature j of group g -> lane G + gf*g + j.
    for g in range(G):
        w_all[2, D * g:D * g + hd, g] = w_np[2][:, gf]
        b_all[2, 0, g] = b_np[2][gf]
        geo0 = G + gf * g
        w_all[2, D * g:D * g + hd, geo0:geo0 + gf] = w_np[2][:, :gf]
        b_all[2, 0, geo0:geo0 + gf] = b_np[2][:gf]

    # color_net first layer: reads only geo lanes; sigma lanes stay zero rows
    # so (possibly negative) sigma never passes through the color-net ReLUs.
    for g in range(G):
        geo0 = G + gf * g
        w_all[3, geo0:geo0 + gf, D * g:D * g + hd] = w_np[3]
        b_all[3, 0, D * g:D * g + hd] = b_np[3]

    # color_net output layer: compact group-major rgb -> lanes [od*g, od*(g+1)).
    for g in range(G):
        w_all[6, D * g:D * g + hd, od * g:od * (g + 1)] = w_np[6]
        b_all[6, 0, od * g:od * (g + 1)] = b_np[6]

    # Invariant (review concern): sigma lanes must not feed the color net.
    assert not w_all[3, :G, :].any()

    meta = dict(D=D, G=G, L=L, out_dim=od, geofeat_dim=gf,
                macs=int(sum(w.shape[0] * w.shape[1] for w, _, _ in layers)))
    return (jnp.asarray(w_all, compute_dtype),
            jnp.asarray(b_all, jnp.float32), meta)


# ---------------------------------------------------------------------------
# Wrapper
# ---------------------------------------------------------------------------
def osg_decoder_forward(x, packed_params, *, row_tile=8192,
                        out_dtype=jnp.float32,
                        vmem_limit_bytes=32 * 1024 * 1024):
    """x: (N, M, C). Returns dict with rgb (N, M, out_dim) and sigma (N, M, 1).

    `packed_params` comes from pack_osg_decoder_params (call once at init).
    Callers may pass x in bfloat16 to halve input HBM traffic (outputs stay
    `out_dtype`, default f32).  `row_tile` (in original rows, 2048-16384 on
    v5e/v6e, <= 8192 on v7x) is a sweepable knob.
    """
    w_all, b_all, meta = packed_params
    D, G, L = meta["D"], meta["G"], meta["L"]
    od = meta["out_dim"]
    cdt = w_all.dtype

    N, M, C = x.shape
    rows = N * M
    x2 = x.reshape(rows, C)
    if C < D:
        # Only hit when n_features < max layer width (not this config);
        # costs one extra HBM pass.
        x2 = jnp.pad(x2, ((0, 0), (0, D - C)))

    # Pad rows only up to the next multiple of G (<= G-1 rows, negligible).
    # The row-tile axis relies on Pallas' ragged last-block handling instead
    # of a host-side full-tile pad: OOB reads are garbage (harmless, results
    # discarded), OOB writes are dropped by the bounded DMA.
    rows_p = _round_up(rows, G)
    if rows_p != rows:
        x2 = jnp.pad(x2, ((0, rows_p - rows), (0, 0)))
    PP = rows_p // G
    xp = x2.reshape(PP, L)          # lane-pack G rows per vector (free reshape)

    # Packed-row tile: largest multiple of 8 within budget; guarantee >= 2
    # grid steps when possible so the "parallel" axis shards across both
    # TensorCores on v7x.
    tm = max(8, min(_round_up(row_tile // G, 8), _round_up(PP, 8)))
    if pl.cdiv(PP, tm) < 2 and PP > 8:
        tm = max(8, _round_up(pl.cdiv(PP, 2), 8))
    grid = (pl.cdiv(PP, tm),)

    rgb_w = od * G
    kernel = functools.partial(
        _osg_decoder_kernel, n_groups=G, rgb_width=rgb_w, compute_dtype=cdt)

    # Advisory cost estimate (real, unpadded work).
    cost = pl.CostEstimate(
        flops=2 * rows * meta["macs"],
        transcendentals=rows * od,
        bytes_accessed=int(rows * C * x.dtype.itemsize
                           + rows * (od + 1) * np.dtype(out_dtype).itemsize
                           + w_all.size * w_all.dtype.itemsize
                           + b_all.size * b_all.dtype.itemsize),
    )

    rgb_flat, sigma_flat = pl.pallas_call(
        kernel,
        out_shape=(jax.ShapeDtypeStruct((PP, rgb_w), out_dtype),
                   jax.ShapeDtypeStruct((PP, G), out_dtype)),
        grid_spec=pltpu.PrefetchScalarGridSpec(
            num_scalar_prefetch=0,
            grid=grid,
            in_specs=[
                pl.BlockSpec((tm, L), lambda i: (i, 0)),
                pl.BlockSpec(w_all.shape, lambda i: (0, 0, 0)),  # resident const
                pl.BlockSpec(b_all.shape, lambda i: (0, 0, 0)),  # resident const
            ],
            out_specs=(pl.BlockSpec((tm, rgb_w), lambda i: (i, 0)),
                       pl.BlockSpec((tm, G), lambda i: (i, 0))),
        ),
        compiler_params=pltpu.CompilerParams(
            dimension_semantics=("parallel",),
            vmem_limit_bytes=vmem_limit_bytes,   # portable across v5e/v6e/v7x
        ),
        cost_estimate=cost,
    )(xp, w_all, b_all)

    rgb = rgb_flat.reshape(rows_p, od)
    sigma = sigma_flat.reshape(rows_p, 1)
    if rows_p != rows:
        rgb = rgb[:rows]
        sigma = sigma[:rows]
    return {"rgb": rgb.reshape(N, M, od), "sigma": sigma.reshape(N, M, 1)}


# ---------------------------------------------------------------------------
# Pure-JAX reference (same math / same compute dtype, no Pallas)
# ---------------------------------------------------------------------------
def _reference_forward(x, sigma_layers, color_layers,
                       decoder_geofeat_dim, decoder_output_dim,
                       compute_dtype=jnp.bfloat16):
    N, M, C = x.shape
    h = x.reshape(N * M, C)

    def fc(h, layer):
        w, b, g = layer
        wt = (w.T * jnp.float32(g)).astype(compute_dtype)
        return jnp.dot(h.astype(compute_dtype), wt,
                       preferred_element_type=jnp.float32) + b

    h = jnp.maximum(fc(h, sigma_layers[0]), 0.0)
    h = jnp.maximum(fc(h, sigma_layers[1]), 0.0)
    h = fc(h, sigma_layers[2])
    geo = h[:, :decoder_geofeat_dim]
    sigma = h[:, decoder_geofeat_dim:decoder_geofeat_dim + 1]
    c = jnp.maximum(fc(geo, color_layers[0]), 0.0)
    c = jnp.maximum(fc(c, color_layers[1]), 0.0)
    c = jnp.maximum(fc(c, color_layers[2]), 0.0)
    c = fc(c, color_layers[3])
    rgb = jax.nn.sigmoid(c) * (1.0 + 2.0 * 0.001) - 0.001
    return {"rgb": rgb.reshape(N, M, decoder_output_dim),
            "sigma": sigma.reshape(N, M, 1)}


# ---------------------------------------------------------------------------
if __name__ == "__main__":
    # Module config (use_viewdirs=False, use_tcnn=False path).
    n_features = 32
    hidden_dim = 32
    decoder_output_dim = 3
    decoder_geofeat_dim = 15

    # Small deterministic inputs: x is (N, M, C) = (2, 64, 32)
    key = jax.random.PRNGKey(0)
    kx, kp = jax.random.split(key)
    x = jax.random.normal(kx, (2, 64, n_features), dtype=jnp.float32)

    sigma_layers, color_layers = make_osg_decoder_params(
        kp, n_features, hidden_dim, decoder_output_dim, decoder_geofeat_dim)

    # Pack once at init (hoisted out of the forward per perf review).
    packed = pack_osg_decoder_params(
        sigma_layers, color_layers, n_features, hidden_dim,
        decoder_output_dim, decoder_geofeat_dim)

    out = osg_decoder_forward(x, packed)
    jax.block_until_ready(out)

    ref = _reference_forward(x, sigma_layers, color_layers,
                             decoder_geofeat_dim, decoder_output_dim)
    assert out["rgb"].shape == (2, 64, decoder_output_dim)
    assert out["sigma"].shape == (2, 64, 1)
    # bf16 MXU inputs with f32 accumulation in both kernel and reference.
    assert jnp.allclose(out["rgb"], ref["rgb"], atol=2e-3, rtol=2e-3)
    assert jnp.allclose(out["sigma"], ref["sigma"], atol=2e-3, rtol=2e-3)

    print("KERNEL_OK")
</pallas_src>

<mosaic_0001>
module attributes {stable_mosaic.version = 11 : i64} {
  func.func @_osg_decoder_kernel(%arg0: i32, %arg1: memref<16x128xf32, #tpu.memory_space<vmem>>, %arg2: memref<7x128x128xbf16, #tpu.memory_space<vmem>>, %arg3: memref<7x1x128xf32, #tpu.memory_space<vmem>>, %arg4: memref<16x12xf32, #tpu.memory_space<vmem>>, %arg5: memref<16x4xf32, #tpu.memory_space<vmem>>) attributes {dimension_semantics = [#tpu.dimension_semantics<parallel>], iteration_bounds = array<i64: 2>, scalar_prefetch = 0 : i64, scratch_operands = 0 : i64, tpu.core_type = #tpu.core_type<tc>, window_params = [{transform_indices = @transform_0, window_bounds = array<i64: 16, 128>}, {pipeline_mode = #tpu.pipeline_mode<synchronous>, transform_indices = @transform_1, window_bounds = array<i64: 7, 128, 128>}, {pipeline_mode = #tpu.pipeline_mode<synchronous>, transform_indices = @transform_2, window_bounds = array<i64: 7, 1, 128>}, {transform_indices = @transform_3, window_bounds = array<i64: 16, 12>}, {transform_indices = @transform_4, window_bounds = array<i64: 16, 4>}]} {
    %c0 = arith.constant 0 : index
    %c0_0 = arith.constant 0 : index
    %0 = vector.load %arg1[%c0, %c0_0] : memref<16x128xf32, #tpu.memory_space<vmem>>, vector<16x128xf32>
    %1 = arith.truncf %0 : vector<16x128xf32> to vector<16x128xbf16>
    %c0_1 = arith.constant 0 : index
    %c0_2 = arith.constant 0 : index
    %c0_3 = arith.constant 0 : index
    %2 = vector.load %arg2[%c0_1, %c0_2, %c0_3] : memref<7x128x128xbf16, #tpu.memory_space<vmem>>, vector<1x128x128xbf16>
    %3 = vector.shape_cast %2 : vector<1x128x128xbf16> to vector<128x128xbf16>
    %cst = arith.constant dense<0.000000e+00> : vector<16x128xf32>
    %4 = tpu.matmul %1, %3, %cst {dimension_numbers = #tpu.dot_dimension_numbers<[1], [0], [0], [1], [0, 0, 1, 1], [], []>} : vector<16x128xbf16>, vector<128x128xbf16>, vector<16x128xf32> -> vector<16x128xf32>
    %c0_4 = arith.constant 0 : index
    %c0_5 = arith.constant 0 : index
    %c0_6 = arith.constant 0 : index
    %5 = vector.load %arg3[%c0_4, %c0_5, %c0_6] : memref<7x1x128xf32, #tpu.memory_space<vmem>>, vector<1x1x128xf32>
    %6 = vector.shape_cast %5 : vector<1x1x128xf32> to vector<1x128xf32>
    %7 = vector.broadcast %6 : vector<1x128xf32> to vector<16x128xf32>
    %8 = arith.addf %4, %7 : vector<16x128xf32>
    %cst_7 = arith.constant 0.000000e+00 : f32
    %9 = vector.broadcast %cst_7 : f32 to vector<16x128xf32>
    %10 = arith.maximumf %8, %9 : vector<16x128xf32>
    %11 = arith.truncf %10 : vector<16x128xf32> to vector<16x128xbf16>
    %c1 = arith.constant 1 : index
    %c0_8 = arith.constant 0 : index
    %c0_9 = arith.constant 0 : index
    %12 = vector.load %arg2[%c1, %c0_8, %c0_9] : memref<7x128x128xbf16, #tpu.memory_space<vmem>>, vector<1x128x128xbf16>
    %13 = vector.shape_cast %12 : vector<1x128x128xbf16> to vector<128x128xbf16>
    %cst_10 = arith.constant dense<0.000000e+00> : vector<16x128xf32>
    %14 = tpu.matmul %11, %13, %cst_10 {dimension_numbers = #tpu.dot_dimension_numbers<[1], [0], [0], [1], [0, 0, 1, 1], [], []>} : vector<16x128xbf16>, vector<128x128xbf16>, vector<16x128xf32> -> vector<16x128xf32>
    %c1_11 = arith.constant 1 : index
    %c0_12 = arith.constant 0 : index
    %c0_13 = arith.constant 0 : index
    %15 = vector.load %arg3[%c1_11, %c0_12, %c0_13] : memref<7x1x128xf32, #tpu.memory_space<vmem>>, vector<1x1x128xf32>
    %16 = vector.shape_cast %15 : vector<1x1x128xf32> to vector<1x128xf32>
    %17 = vector.broadcast %16 : vector<1x128xf32> to vector<16x128xf32>
    %18 = arith.addf %14, %17 : vector<16x128xf32>
    %cst_14 = arith.constant 0.000000e+00 : f32
    %19 = vector.broadcast %cst_14 : f32 to vector<16x128xf32>
    %20 = arith.maximumf %18, %19 : vector<16x128xf32>
    %21 = arith.truncf %20 : vector<16x128xf32> to vector<16x128xbf16>
    %c2 = arith.constant 2 : index
    %c0_15 = arith.constant 0 : index
    %c0_16 = arith.constant 0 : index
    %22 = vector.load %arg2[%c2, %c0_15, %c0_16] : memref<7x128x128xbf16, #tpu.memory_space<vmem>>, vector<1x128x128xbf16>
    %23 = vector.shape_cast %22 : vector<1x128x128xbf16> to vector<128x128xbf16>
    %cst_17 = arith.constant dense<0.000000e+00> : vector<16x128xf32>
    %24 = tpu.matmul %21, %23, %cst_17 {dimension_numbers = #tpu.dot_dimension_numbers<[1], [0], [0], [1], [0, 0, 1, 1], [], []>} : vector<16x128xbf16>, vector<128x128xbf16>, vector<16x128xf32> -> vector<16x128xf32>
    %c2_18 = arith.constant 2 : index
    %c0_19 = arith.constant 0 : index
    %c0_20 = arith.constant 0 : index
    %25 = vector.load %arg3[%c2_18, %c0_19, %c0_20] : memref<7x1x128xf32, #tpu.memory_space<vmem>>, vector<1x1x128xf32>
    %26 = vector.shape_cast %25 : vector<1x1x128xf32> to vector<1x128xf32>
    %27 = vector.broadcast %26 : vector<1x128xf32> to vector<16x128xf32>
    %28 = arith.addf %24, %27 : vector<16x128xf32>
    %29 = vector.extract_strided_slice %28 {offsets = [0, 0], sizes = [16, 4], strides = [1, 1]} : vector<16x128xf32> to vector<16x4xf32>
    %c0_21 = arith.constant 0 : index
    %c0_22 = arith.constant 0 : index
    %30 = vector.load %arg5[%c0_21, %c0_22] : memref<16x4xf32, #tpu.memory_space<vmem>>, vector<16x4xf32>
    tpu.vector_store %arg5[%c0_21, %c0_22], %29 {strides = array<i32>} : memref<16x4xf32, #tpu.memory_space<vmem>>, vector<16x4xf32>,
    %31 = arith.truncf %28 : vector<16x128xf32> to vector<16x128xbf16>
    %c3 = arith.constant 3 : index
    %c0_23 = arith.constant 0 : index
    %c0_24 = arith.constant 0 : index
    %32 = vector.load %arg2[%c3, %c0_23, %c0_24] : memref<7x128x128xbf16, #tpu.memory_space<vmem>>, vector<1x128x128xbf16>
    %33 = vector.shape_cast %32 : vector<1x128x128xbf16> to vector<128x128xbf16>
    %cst_25 = arith.constant dense<0.000000e+00> : vector<16x128xf32>
    %34 = tpu.matmul %31, %33, %cst_25 {dimension_numbers = #tpu.dot_dimension_numbers<[1], [0], [0], [1], [0, 0, 1, 1], [], []>} : vector<16x128xbf16>, vector<128x128xbf16>, vector<16x128xf32> -> vector<16x128xf32>
    %c3_26 = arith.constant 3 : index
    %c0_27 = arith.constant 0 : index
    %c0_28 = arith.constant 0 : index
    %35 = vector.load %arg3[%c3_26, %c0_27, %c0_28] : memref<7x1x128xf32, #tpu.memory_space<vmem>>, vector<1x1x128xf32>
    %36 = vector.shape_cast %35 : vector<1x1x128xf32> to vector<1x128xf32>
    %37 = vector.broadcast %36 : vector<1x128xf32> to vector<16x128xf32>
    %38 = arith.addf %34, %37 : vector<16x128xf32>
    %cst_29 = arith.constant 0.000000e+00 : f32
    %39 = vector.broadcast %cst_29 : f32 to vector<16x128xf32>
    %40 = arith.maximumf %38, %39 : vector<16x128xf32>
    %41 = arith.truncf %40 : vector<16x128xf32> to vector<16x128xbf16>
    %c4 = arith.constant 4 : index
    %c0_30 = arith.constant 0 : index
    %c0_31 = arith.constant 0 : index
    %42 = vector.load %arg2[%c4, %c0_30, %c0_31] : memref<7x128x128xbf16, #tpu.memory_space<vmem>>, vector<1x128x128xbf16>
    %43 = vector.shape_cast %42 : vector<1x128x128xbf16> to vector<128x128xbf16>
    %cst_32 = arith.constant dense<0.000000e+00> : vector<16x128xf32>
    %44 = tpu.matmul %41, %43, %cst_32 {dimension_numbers = #tpu.dot_dimension_numbers<[1], [0], [0], [1], [0, 0, 1, 1], [], []>} : vector<16x128xbf16>, vector<128x128xbf16>, vector<16x128xf32> -> vector<16x128xf32>
    %c4_33 = arith.constant 4 : index
    %c0_34 = arith.constant 0 : index
    %c0_35 = arith.constant 0 : index
    %45 = vector.load %arg3[%c4_33, %c0_34, %c0_35] : memref<7x1x128xf32, #tpu.memory_space<vmem>>, vector<1x1x128xf32>
    %46 = vector.shape_cast %45 : vector<1x1x128xf32> to vector<1x128xf32>
    %47 = vector.broadcast %46 : vector<1x128xf32> to vector<16x128xf32>
    %48 = arith.addf %44, %47 : vector<16x128xf32>
    %cst_36 = arith.constant 0.000000e+00 : f32
    %49 = vector.broadcast %cst_36 : f32 to vector<16x128xf32>
    %50 = arith.maximumf %48, %49 : vector<16x128xf32>
    %51 = arith.truncf %50 : vector<16x128xf32> to vector<16x128xbf16>
    %c5 = arith.constant 5 : index
    %c0_37 = arith.constant 0 : index
    %c0_38 = arith.constant 0 : index
    %52 = vector.load %arg2[%c5, %c0_37, %c0_38] : memref<7x128x128xbf16, #tpu.memory_space<vmem>>, vector<1x128x128xbf16>
    %53 = vector.shape_cast %52 : vector<1x128x128xbf16> to vector<128x128xbf16>
    %cst_39 = arith.constant dense<0.000000e+00> : vector<16x128xf32>
    %54 = tpu.matmul %51, %53, %cst_39 {dimension_numbers = #tpu.dot_dimension_numbers<[1], [0], [0], [1], [0, 0, 1, 1], [], []>} : vector<16x128xbf16>, vector<128x128xbf16>, vector<16x128xf32> -> vector<16x128xf32>
    %c5_40 = arith.constant 5 : index
    %c0_41 = arith.constant 0 : index
    %c0_42 = arith.constant 0 : index
    %55 = vector.load %arg3[%c5_40, %c0_41, %c0_42] : memref<7x1x128xf32, #tpu.memory_space<vmem>>, vector<1x1x128xf32>
    %56 = vector.shape_cast %55 : vector<1x1x128xf32> to vector<1x128xf32>
    %57 = vector.broadcast %56 : vector<1x128xf32> to vector<16x128xf32>
    %58 = arith.addf %54, %57 : vector<16x128xf32>
    %cst_43 = arith.constant 0.000000e+00 : f32
    %59 = vector.broadcast %cst_43 : f32 to vector<16x128xf32>
    %60 = arith.maximumf %58, %59 : vector<16x128xf32>
    %61 = arith.truncf %60 : vector<16x128xf32> to vector<16x128xbf16>
    %c6 = arith.constant 6 : index
    %c0_44 = arith.constant 0 : index
    %c0_45 = arith.constant 0 : index
    %62 = vector.load %arg2[%c6, %c0_44, %c0_45] : memref<7x128x128xbf16, #tpu.memory_space<vmem>>, vector<1x128x128xbf16>
    %63 = vector.shape_cast %62 : vector<1x128x128xbf16> to vector<128x128xbf16>
    %cst_46 = arith.constant dense<0.000000e+00> : vector<16x128xf32>
    %64 = tpu.matmul %61, %63, %cst_46 {dimension_numbers = #tpu.dot_dimension_numbers<[1], [0], [0], [1], [0, 0, 1, 1], [], []>} : vector<16x128xbf16>, vector<128x128xbf16>, vector<16x128xf32> -> vector<16x128xf32>
    %c6_47 = arith.constant 6 : index
    %c0_48 = arith.constant 0 : index
    %c0_49 = arith.constant 0 : index
    %65 = vector.load %arg3[%c6_47, %c0_48, %c0_49] : memref<7x1x128xf32, #tpu.memory_space<vmem>>, vector<1x1x128xf32>
    %66 = vector.shape_cast %65 : vector<1x1x128xf32> to vector<1x128xf32>
    %67 = vector.broadcast %66 : vector<1x128xf32> to vector<16x128xf32>
    %68 = arith.addf %64, %67 : vector<16x128xf32>
    %69 = vector.extract_strided_slice %68 {offsets = [0, 0], sizes = [16, 12], strides = [1, 1]} : vector<16x128xf32> to vector<16x12xf32>
    %70 = arith.negf %69 : vector<16x12xf32>
    %71 = math.exp %70 : vector<16x12xf32>
    %cst_50 = arith.constant 1.000000e+00 : f32
    %72 = vector.broadcast %cst_50 : f32 to vector<16x12xf32>
    %73 = arith.addf %72, %71 : vector<16x12xf32>
    %74 = arith.divf %72, %73 : vector<16x12xf32>
    %cst_51 = arith.constant 1.002000e+00 : f32
    %75 = vector.broadcast %cst_51 : f32 to vector<16x12xf32>
    %76 = arith.mulf %74, %75 : vector<16x12xf32>
    %cst_52 = arith.constant 1.000000e-03 : f32
    %77 = vector.broadcast %cst_52 : f32 to vector<16x12xf32>
    %78 = arith.subf %76, %77 : vector<16x12xf32>
    %c0_53 = arith.constant 0 : index
    %c0_54 = arith.constant 0 : index
    %79 = vector.load %arg4[%c0_53, %c0_54] : memref<16x12xf32, #tpu.memory_space<vmem>>, vector<16x12xf32>
    tpu.vector_store %arg4[%c0_53, %c0_54], %78 {strides = array<i32>} : memref<16x12xf32, #tpu.memory_space<vmem>>, vector<16x12xf32>,
    return
  }
  func.func @transform_0(%arg0: i32) -> (i32, i32) {
    %c0_i32 = arith.constant 0 : i32
    %c0_i32_0 = arith.constant 0 : i32
    return %arg0, %c0_i32 : i32, i32
  }
  func.func @transform_1(%arg0: i32) -> (i32, i32, i32) {
    %c0_i32 = arith.constant 0 : i32
    %c0_i32_0 = arith.constant 0 : i32
    %c0_i32_1 = arith.constant 0 : i32
    %c0_i32_2 = arith.constant 0 : i32
    return %c0_i32, %c0_i32_0, %c0_i32_1 : i32, i32, i32
  }
  func.func @transform_2(%arg0: i32) -> (i32, i32, i32) {
    %c0_i32 = arith.constant 0 : i32
    %c0_i32_0 = arith.constant 0 : i32
    %c0_i32_1 = arith.constant 0 : i32
    %c0_i32_2 = arith.constant 0 : i32
    return %c0_i32, %c0_i32_0, %c0_i32_1 : i32, i32, i32
  }
  func.func @transform_3(%arg0: i32) -> (i32, i32) {
    %c0_i32 = arith.constant 0 : i32
    %c0_i32_0 = arith.constant 0 : i32
    return %arg0, %c0_i32 : i32, i32
  }
  func.func @transform_4(%arg0: i32) -> (i32, i32) {
    %c0_i32 = arith.constant 0 : i32
    %c0_i32_0 = arith.constant 0 : i32
    return %arg0, %c0_i32 : i32, i32
  }
}

</mosaic_0001>

<bundles_post_ra>
// kernel: tpu_custom_call.1
= control target key start
LH: loop header
LB: loop body
LE: loop exit
PB: predicated region body
PF: predicated region fallthrough
CT: control target
= control target key end

     0   :  { %10 = vsyncpa [#allocation3], 0  ;;  %s1714_s0 = inlined_call_operand.hbm [shape: f32[32,128], index: 0, kind: input, shape index: {}]   ;;  %s1715_s1 = inlined_call_operand.hbm [shape: bf16[7,128,128], index: 1, kind: input, shape index: {}]   ;;  %s1716_s2 = inlined_call_operand.hbm [shape: f32[7,1,128], index: 2, kind: input, shape index: {}]   ;;  %s1717_s3 = inlined_call_operand.vmem [shape: f32[32,12], index: 3, kind: output, shape index: {0}]   ;;  %s1718_s4 = inlined_call_operand.vmem [shape: f32[32,4], index: 4, kind: output, shape index: {1}]  }
   0x1   :  { %12 = vsyncpa [#allocation3 + $0x1], 0 }
   0x2   :  { %13 = vsyncpa [#allocation5], 0  ;;  %s1590_s15 = smov 0   ;;  %s1592_s16 = smov 0  }
   0x3   :  { %s1594_s17 = smov 0   ;;  %s1596_s18 = smov 0  }
   0x4 LB: > { %s1042_s19 = sadd.s32 4294967295, %s1555_s18   ;;  %p39_p0 = scmp.ne.s32.totalorder %s1547_s16, %s1543_s15  ;;  %s1555_s18 = sphi %s1596_s18, %s1726_s18   ;;  %s1551_s17 = sphi %s1594_s17, %s1725_s17   ;;  %s1547_s16 = sphi %s1592_s16, %s1724_s16   ;;  %s1543_s15 = sphi %s1590_s15, %s1723_s15  }
   0x5   : > { %p1612_p1 = scmp.eq.s32.totalorder %s1042_s19, 0  ;;  %p1044_p2 = scmp.ge.s32.totalorder %s1555_s18, 1 }
   0x6   : > { %p144_p3 = scmp.lt.s32.totalorder %s1555_s18, 3  ;;  %s155_s24 = sshll.u32 %s1715_s1, 4  ;;  %s156_s24 = int_to_ptr.hbm [resolvable:$true] %s155_s24 }
   0x7   : > { %p1620_p4 = por %p1612_p1, %p39_p0  ;;  %s1557_s26 = smov [#allocation4]  }
   0x8   : > { %p1627_p5 = pnand %p1044_p2, %p144_p3  ;;  %s157_s27 = sshll.u32 %s1557_s26, 4  ;;  %s158_s27 = int_to_ptr.vmem [resolvable:$true] %s157_s27 }
   0x9   : > { %s169_s30 = sshll.u32 %s1716_s2, 4  ;;  %s1558_s5 = smov 64   ;;  %s170_s30 = int_to_ptr.hbm [resolvable:$true] %s169_s30 }
   0xa   : > { %p1356_p6 = pneg %p1627_p5  ;;  %s1559_s6 = smov 4  }
   0xb   : > { %s1560_s7 = smov [#allocation6]   ;;  %s1561_s9 = smov 16  }
   0xc   : > { %p1357_p7 = pnand %p1356_p6, %p1612_p1  ;;  %s171_s8 = sshll.u32 %s1560_s7, 4  ;;  %s172_s8 = int_to_ptr.vmem [resolvable:$true] %s171_s8 }
   0xd   : > { %s1562_s10 = smov 1   ;;  %s1639_s11 = sadd.s32 1, %s1555_s18  }
   0xe   : > { %1359 = dma.hbm_to_vmem [thread:$0]  (!%p1357_p7), %s156_s24, 7168, %s158_s27, [#allocation5], %s1558_s5, %s1558_s5, %s1559_s6  }
   0xf   : > { %1362 = dma.hbm_to_vmem [thread:$0]  (!%p1357_p7), %s170_s30, 112, %s172_s8, [#allocation5], %s1561_s9, %s1561_s9, %s1562_s10  }
  0x10   : > { %s23_s12 = ssub.s32 %s1555_s18, %s1639_s11  ;;  %s26_s13 = sadd.s32 1, %s1551_s17 }
  0x11   : > { %p24_p8 = scmp.eq.s32.totalorder %s23_s12, 0  ;;  %p33_p9 = scmp.ne.s32.totalorder %s1551_s17, %s1547_s16 }
  0x12   : > { %p34_p10 = scmp.eq.s32.totalorder %s1555_s18, 0  ;;  %p1369_p12 = scmp.lt.s32.totalorder %s1555_s18, 2 }
  0x13   : > { %s1648_s14 = scalar_select %p24_p8, %s1551_s17, %s26_s13  }
  0x14   : > { %p35_p11 = por %p34_p10, %p33_p9  ;;  %s185_s15 = sand.u32 1, %s1551_s17  }
  0x15   : > { %s1289_s22 = sshll.u32 %s1555_s18, 4  ;;  %s1048_s23 = sshll.u32 %s185_s15, 4 }
  0x16   : > { %s194_s27 = scalar_lea.hbm %s1714_s0, %s1289_s22  ;;  %s189_s29 = scalar_lea.vmem [#allocation2], %s1048_s23 }
  0x17   : > { %s195_s28 = sshll.u32 %s194_s27, 4  ;;  %s197_s30 = sshll.u32 %s189_s29, 4  ;;  %s196_s28 = int_to_ptr.hbm [resolvable:$true] %s195_s28  ;;  %s198_s30 = int_to_ptr.vmem [resolvable:$true] %s197_s30 }
  0x18   : > { %p1656_p13 = pnand %p1369_p12, %p35_p11  ;;  %s186_s6 = scalar_lea.sflag [#allocation3], %s185_s15 }
  0x19   : > { %s1487_s7 = sshra.s32 %s196_s28, 4  ;;  %s1494_s12 = scalar_lea.hbm %s1714_s0, 32  ;;  %s1488_s7 = int_to_ptr.hbm [resolvable:$true] %s1487_s7 }
  0x1a   : > { %s1489_s8 = scalar_lea.hbm %s1488_s7, 16  ;;  %p1491_p2 = pneg %p1656_p13 }
  0x1b   : > { %p1490_p0 = scmp.ne.s32.totalorder %s1488_s7, %s1489_s8  ;;  %p1495_p7 = scmp.lt.s32.totalorder %s1488_s7, %s1714_s0 }
  0x1c   : > { %p1496_p8 = scmp.lt.s32.totalorder %s1494_s12, %s1489_s8 }
  0x1d   : > { %p1492_p3 = pnand %p1491_p2, %p1490_p0 }
  0x1e   : > { %p1497_p9 = por %p1496_p8, %p1495_p7 }
  0x1f   : > { %p1493_p6 = pneg %p1492_p3 }
  0x21   : > { %p1498_p10 = pnand %p1497_p9, %p1493_p6 }
  0x23   : > { %1501 = shalt.err (!%p1498_p10)
}
  0x24   : > { %s1563_s15 = smov 128   ;;  %s1564_s23 = smov 8  }
  0x25   : > { %1366 = dma.hbm_to_vmem [thread:$0]  (!%p1656_p13), %s196_s28, 256, %s198_s30, %s186_s6, %s1563_s15, %s1563_s15, %s1564_s23  }
  0x26   : > { %209 = sbr.rel (%p1627_p5) target bundleno = 1103 (0x44f), region = 32  ;;  %s211_s24 = sand.u32 (!%p1627_p5), 1, %s1547_s16  }
  0x27   : > { %s1673_s26 = sshll.u32 (!%p1627_p5), %s211_s24, 4  ;;  %s212_s27 = scalar_lea.sflag (!%p1627_p5), [#allocation3], %s211_s24 }
  0x28   : > { %s215_s29 = scalar_lea.vmem (!%p1627_p5), [#allocation2], %s1673_s26 }
  0x2b   : > { %1534 = dma.done.wait (%p1620_p4), %s212_s27, 256  }
  0x2c   : > { %1536 = vsyncadd (%p1620_p4), %s212_s27, 4294967040 }
  0x2d   : > { %1538 = dma.done.wait (%p1612_p1), [#allocation5], 7280  }
  0x2e   : > { %1540 = vsyncadd (%p1612_p1), [#allocation5], 4294960016  ;;  %v1297_v0 = vld [vmem:[#allocation4 + $0x38] sm:$0xff]  ;;  %v1296_v1 = vld [vmem:[#allocation4 + $0x30] sm:$0xff]  ;;  %s1055_s20 = sshll.u32 %s1042_s19, 1  ;;  %vm528_vm0 = vcmask 31744  }
  0x2f   : > { %340 = vmatpush.bf16.msra.mxu0 %v1297_v0  ;;  %v1305_v2 = vld [vmem:[#allocation4 + $0x78] sm:$0xff]  ;;  %v1295_v3 = vld [vmem:[#allocation4 + $0x28] sm:$0xff]  ;;  %v1304_v4 = vld [vmem:[#allocation4 + $0x70] sm:$0xff]  ;;  %p258_p1 = scmp.lt.s32.totalorder %s1055_s20, 3  ;;  %vm919_vm5 = vcmask 97280  }
  0x30   : > { %427 = vmatpush.bf16.msra.mxu1 %v1305_v2  ;;  %v1303_v5 = vld [vmem:[#allocation4 + $0x68] sm:$0xff]  ;;  %v1294_v6 = vld [vmem:[#allocation4 + $0x20] sm:$0xff]  ;;  %v1293_v8 = vld [vmem:[#allocation4 + $0x18] sm:$0xff] }
  0x31   : > { %v1302_v7 = vld [vmem:[#allocation4 + $0x60] sm:$0xff]  ;;  %v1292_v9 = vld [vmem:[#allocation4 + $0x10] sm:$0xff]  ;;  %v1291_v10 = vld [vmem:[#allocation4 + $0x8] sm:$0xff]  ;;  %s1728_s20 = smov (!%p258_p1, %s1055_s20), 3 }
  0x32   : > { %v1290_v11 = vld [vmem:[#allocation4] sm:$0xff]  ;;  %v270_v13 = vld [vmem:[%s215_s29 + $0x8] sm:$0xff]  ;;  %v1300_v16 = vld [vmem:[#allocation4 + $0x50] sm:$0xff]  ;;  %s1056_s21 = sshll.u32 %s1728_s20, 3 }
  0x33   : > { %341 = vmatpush.bf16.msra.mxu0 %v1296_v1  ;;  %v269_v12 = vld [vmem:[%s215_s29] sm:$0xff]  ;;  %v1301_v15 = vld [vmem:[#allocation4 + $0x58] sm:$0xff]  ;;  %v1299_v17 = vld [vmem:[#allocation4 + $0x48] sm:$0xff]  ;;  %s267_s30 = scalar_lea.vmem %s1718_s4, %s1056_s21  ;;  %s261_s5 = scalar_lea.vmem %s1717_s3, %s1056_s21 }
  0x34   : > { %428 = vmatpush.bf16.msra.mxu1 %v1304_v4  ;;  %v271_v14 = vpack.c.bf16 %v270_v13, %v269_v12  ;;  %v1298_v18 = vld [vmem:[#allocation4 + $0x40] sm:$0xff]  ;;  %v1313_v19 = vld [vmem:[#allocation4 + $0xb8] sm:$0xff]  ;;  %v1312_v20 = vld [vmem:[#allocation4 + $0xb0] sm:$0xff] }
  0x35   : > { %514 = vmatpush.bf16.msra.mxu2 %v1313_v19  ;;  %v1311_v21 = vld [vmem:[#allocation4 + $0xa8] sm:$0xff]  ;;  %v1310_v22 = vld [vmem:[#allocation4 + $0xa0] sm:$0xff]  ;;  %v1309_v31 = vld [vmem:[#allocation4 + $0x98] sm:$0xff] }
  0x36   : > { %v1412_v24 = vld [vmem:[#allocation6] ss:$0 sm:$0xff]  ;;  %v1308_v32 = vld [vmem:[#allocation4 + $0x90] sm:$0xff]  ;;  %v1307_v33 = vld [vmem:[#allocation4 + $0x88] sm:$0xff] }
  0x37   : > { %342 = vmatpush.bf16.msra.mxu0 %v1295_v3  ;;  %v1306_v34 = vld [vmem:[#allocation4 + $0x80] sm:$0xff]  ;;  %v1321_v35 = vld [vmem:[#allocation4 + $0xf8] sm:$0xff]  ;;  %v1320_v36 = vld [vmem:[#allocation4 + $0xf0] sm:$0xff] }
  0x38   : > { %429 = vmatpush.bf16.msra.mxu1 %v1303_v5  ;;  %602 = vmatpush.bf16.msra.mxu3 %v1321_v35  ;;  %v1319_v37 = vld [vmem:[#allocation4 + $0xe8] sm:$0xff]  ;;  %v1318_v38 = vld [vmem:[#allocation4 + $0xe0] sm:$0xff]  ;;  %v1317_v39 = vld [vmem:[#allocation4 + $0xd8] sm:$0xff] }
  0x39   : > { %515 = vmatpush.bf16.msra.mxu2 %v1312_v20  ;;  %v1413_v41 = vld [vmem:[#allocation6 + $0x1] ss:$0 sm:$0xff]  ;;  %v1316_v48 = vld [vmem:[#allocation4 + $0xd0] sm:$0xff]  ;;  %v1315_v49 = vld [vmem:[#allocation4 + $0xc8] sm:$0xff] }
  0x3a   : > { %v1314_v50 = vld [vmem:[#allocation4 + $0xc0] sm:$0xff]  ;;  %v1329_v51 = vld [vmem:[#allocation4 + $0x138] sm:$0xff]  ;;  %v1328_v52 = vld [vmem:[#allocation4 + $0x130] sm:$0xff] }
  0x3b   : > { %343 = vmatpush.bf16.msra.mxu0 %v1294_v6  ;;  %v1327_v53 = vld [vmem:[#allocation4 + $0x128] sm:$0xff]  ;;  %v1326_v54 = vld [vmem:[#allocation4 + $0x120] sm:$0xff]  ;;  %v1325_v61 = vld [vmem:[#allocation4 + $0x118] sm:$0xff] }
  0x3c   : > { %430 = vmatpush.bf16.msra.mxu1 %v1302_v7  ;;  %603 = vmatpush.bf16.msra.mxu3 %v1320_v36  ;;  %v1414_v55 = vld [vmem:[#allocation6 + $0x2] ss:$0 sm:$0xff]  ;;  %v1324_v62 = vld [vmem:[#allocation4 + $0x110] sm:$0xff]  ;;  %v1323_v63 = vld [vmem:[#allocation4 + $0x108] sm:$0xff] }
  0x3d   : > { %516 = vmatpush.bf16.msra.mxu2 %v1311_v21  ;;  %v1322_v0 = vld [vmem:[#allocation4 + $0x100] sm:$0xff]  ;;  %v1337_v1 = vld [vmem:[#allocation4 + $0x178] sm:$0xff]  ;;  %v1336_v2 = vld [vmem:[#allocation4 + $0x170] sm:$0xff] }
  0x3e   : > { %v1335_v3 = vld [vmem:[#allocation4 + $0x168] sm:$0xff]  ;;  %v1334_v4 = vld [vmem:[#allocation4 + $0x160] sm:$0xff]  ;;  %v1333_v13 = vld [vmem:[#allocation4 + $0x158] sm:$0xff] }
  0x3f   : > { %344 = vmatpush.bf16.msra.mxu0 %v1293_v8  ;;  %v1415_v6 = vld [vmem:[#allocation6 + $0x3] ss:$0 sm:$0xff]  ;;  %v1343_v19 = vld [vmem:[#allocation4 + $0x1a8] sm:$0xff] }
  0x40   : > { %431 = vmatpush.bf16.msra.mxu1 %v1301_v15  ;;  %604 = vmatpush.bf16.msra.mxu3 %v1319_v37  ;;  %v1331_v15 = vld [vmem:[#allocation4 + $0x148] sm:$0xff]  ;;  %v1342_v20 = vld [vmem:[#allocation4 + $0x1a0] sm:$0xff] }
  0x41   : > { %517 = vmatpush.bf16.msra.mxu2 %v1310_v22  ;;  %v1416_v22 = vld [vmem:[#allocation6 + $0x4] ss:$0 sm:$0xff] }
  0x43   : > { %345 = vmatpush.bf16.msra.mxu0 %v1292_v9 }
  0x44   : > { %432 = vmatpush.bf16.msra.mxu1 %v1300_v16  ;;  %605 = vmatpush.bf16.msra.mxu3 %v1318_v38  ;;  %v1330_v16 = vld [vmem:[#allocation4 + $0x140] sm:$0xff] }
  0x45   : > { %518 = vmatpush.bf16.msra.mxu2 %v1309_v31  ;;  %v1339_v31 = vld [vmem:[#allocation4 + $0x188] sm:$0xff] }
  0x47   : > { %346 = vmatpush.bf16.msra.mxu0 %v1291_v10 }
  0x48   : > { %433 = vmatpush.bf16.msra.mxu1 %v1299_v17  ;;  %606 = vmatpush.bf16.msra.mxu3 %v1317_v39  ;;  %v1345_v17 = vld [vmem:[#allocation4 + $0x1b8] sm:$0xff] }
  0x49   : > { %519 = vmatpush.bf16.msra.mxu2 %v1308_v32  ;;  %v1338_v32 = vld [vmem:[#allocation4 + $0x180] sm:$0xff] }
  0x4b   : > { %347 = vmatpush.bf16.msra.mxu0 %v1290_v11 }
  0x4c   : > { %434 = vmatpush.bf16.msra.mxu1 %v1298_v18  ;;  %607 = vmatpush.bf16.msra.mxu3 %v1316_v48  ;;  %v1344_v18 = vld [vmem:[#allocation4 + $0x1b0] sm:$0xff] }
  0x4d   : > { %520 = vmatpush.bf16.msra.mxu2 %v1307_v33 }
  0x4e   : > { %348 = vmatmul.bf16.vlgmr.msra.gmra.mxu0 %v271_v14  ;;  %v1332_v14 = vld [vmem:[#allocation4 + $0x150] sm:$0xff] }
  0x4f   : > { %689 = vmatpush.bf16.msrb.mxu0 %v1329_v51 }
  0x50   : > { %608 = vmatpush.bf16.msra.mxu3 %v1315_v49  ;;  %776 = vmatpush.bf16.msrb.mxu1 %v1337_v1 }
  0x51   : > { %521 = vmatpush.bf16.msra.mxu2 %v1306_v34  ;;  %v1417_v34 = vld [vmem:[#allocation6 + $0x5] ss:$0 sm:$0xff] }
  0x53   : > { %690 = vmatpush.bf16.msrb.mxu0 %v1328_v52 }
  0x54   : > { %609 = vmatpush.bf16.msra.mxu3 %v1314_v50  ;;  %777 = vmatpush.bf16.msrb.mxu1 %v1336_v2 }
  0x55   : > { %863 = vmatpush.bf16.msrb.mxu2 %v1345_v17 }
  0x57   : > { %691 = vmatpush.bf16.msrb.mxu0 %v1327_v53 }
  0x58   : > { %778 = vmatpush.bf16.msrb.mxu1 %v1335_v3 }
  0x59   : > { %864 = vmatpush.bf16.msrb.mxu2 %v1344_v18 }
  0x5b   : > { %692 = vmatpush.bf16.msrb.mxu0 %v1326_v54 }
  0x5c   : > { %779 = vmatpush.bf16.msrb.mxu1 %v1334_v4 }
  0x5d   : > { %865 = vmatpush.bf16.msrb.mxu2 %v1343_v19 }
  0x5f   : > { %693 = vmatpush.bf16.msrb.mxu0 %v1325_v61 }
  0x60   : > { %780 = vmatpush.bf16.msrb.mxu1 %v1333_v13 }
  0x61   : > { %866 = vmatpush.bf16.msrb.mxu2 %v1342_v20 }
  0x63   : > { %694 = vmatpush.bf16.msrb.mxu0 %v1324_v62 }
  0x64   : > { %781 = vmatpush.bf16.msrb.mxu1 %v1332_v14 }
  0x67   : > { %695 = vmatpush.bf16.msrb.mxu0 %v1323_v63 }
  0x68   : > { %782 = vmatpush.bf16.msrb.mxu1 %v1331_v15 }
  0x6b   : > { %696 = vmatpush.bf16.msrb.mxu0 %v1322_v0 }
  0x6c   : > { %783 = vmatpush.bf16.msrb.mxu1 %v1330_v16 }
  0xcb   : > { %v349_v23 = vpop.f32.mrf.mxu0 }
  0xcc   : > { %v350_v25 = vadd.f32 %v1412_v24, %v349_v23 }
  0xce   : > { %v354_v28 = vmax.f32 %v350_v25, 0.0 }
  0xd3   : > { %v351_v26 = vpop.f32.mrf.mxu0 }
  0xd4   : > { %v352_v27 = vadd.f32 %v1412_v24, %v351_v26 }
  0xd6   : > { %v355_v29 = vmax.f32 %v352_v27, 0.0 }
  0xd8   : > { %v356_v30 = vpack.c.bf16 %v355_v29, %v354_v28  ;;  %v1341_v29 = vld [vmem:[#allocation4 + $0x198] sm:$0xff] }
  0xd9   : > { %867 = vmatpush.bf16.msrb.mxu2 %v1341_v29 }
  0xda   : > { %435 = vmatmul.bf16.vlgmr.msra.gmra.mxu1 %v356_v30  ;;  %v1340_v30 = vld [vmem:[#allocation4 + $0x190] sm:$0xff] }
  0xdd   : > { %868 = vmatpush.bf16.msrb.mxu2 %v1340_v30 }
  0xe1   : > { %869 = vmatpush.bf16.msrb.mxu2 %v1339_v31 }
  0xe5   : > { %870 = vmatpush.bf16.msrb.mxu2 %v1338_v32 }
 0x157   : > { %v436_v40 = vpop.f32.mrf.mxu1 }
 0x158   : > { %v437_v42 = vadd.f32 %v1413_v41, %v436_v40 }
 0x15a   : > { %v441_v45 = vmax.f32 %v437_v42, 0.0 }
 0x15f   : > { %v438_v43 = vpop.f32.mrf.mxu1 }
 0x160   : > { %v439_v44 = vadd.f32 %v1413_v41, %v438_v43  ;;  %v1418_v41 = vld [vmem:[#allocation6 + $0x6] ss:$0 sm:$0xff] }
 0x162   : > { %v442_v46 = vmax.f32 %v439_v44, 0.0 }
 0x164   : > { %v443_v47 = vpack.c.bf16 %v442_v46, %v441_v45 }
 0x166   : > { %522 = vmatmul.bf16.vlgmr.msra.gmra.mxu2 %v443_v47 }
 0x1e9   : > { %v523_v56 = vpop.f32.mrf.mxu2 }
 0x1ea   : > { %v524_v57 = vadd.f32 %v1414_v55, %v523_v56 }
 0x1ec   : > { %529 = vst.msk [vmem:[%s267_s30] sm:$0xff] %vm528_vm0, %v524_v57 }
 0x1f1   : > { %v525_v58 = vpop.f32.mrf.mxu2 }
 0x1f2   : > { %v526_v59 = vadd.f32 %v1414_v55, %v525_v58 }
 0x1f4   : > { %530 = vst.msk [vmem:[%s267_s30 + $0x8] sm:$0xff] %vm528_vm0, %v526_v59  ;;  %v531_v60 = vpack.c.bf16 %v526_v59, %v524_v57 }
 0x1f6   : > { %610 = vmatmul.bf16.vlgmr.msra.gmra.mxu3 %v531_v60 }
 0x279   : > { %v611_v5 = vpop.f32.mrf.mxu3 }
 0x27a   : > { %v612_v7 = vadd.f32 %v1415_v6, %v611_v5 }
 0x27c   : > { %v616_v10 = vmax.f32 %v612_v7, 0.0 }
 0x281   : > { %v613_v8 = vpop.f32.mrf.mxu3 }
 0x282   : > { %v614_v9 = vadd.f32 %v1415_v6, %v613_v8 }
 0x284   : > { %v617_v11 = vmax.f32 %v614_v9, 0.0 }
 0x286   : > { %v618_v12 = vpack.c.bf16 %v617_v11, %v616_v10 }
 0x288   : > { %697 = vmatmul.bf16.vlgmr.msrb.gmra.mxu0 %v618_v12 }
 0x305   : > { %v698_v21 = vpop.f32.mrf.mxu0 }
 0x306   : > { %v699_v23 = vadd.f32 %v1416_v22, %v698_v21 }
 0x308   : > { %v703_v26 = vmax.f32 %v699_v23, 0.0 }
 0x30d   : > { %v700_v24 = vpop.f32.mrf.mxu0 }
 0x30e   : > { %v701_v25 = vadd.f32 %v1416_v22, %v700_v24 }
 0x310   : > { %v704_v27 = vmax.f32 %v701_v25, 0.0 }
 0x312   : > { %v705_v28 = vpack.c.bf16 %v704_v27, %v703_v26 }
 0x314   : > { %784 = vmatmul.bf16.vlgmr.msrb.gmra.mxu1 %v705_v28 }
 0x391   : > { %v785_v33 = vpop.f32.mrf.mxu1 }
 0x392   : > { %v786_v35 = vadd.f32 %v1417_v34, %v785_v33 }
 0x394   : > { %v790_v38 = vmax.f32 %v786_v35, 0.0 }
 0x399   : > { %v787_v36 = vpop.f32.mrf.mxu1 }
 0x39a   : > { %v788_v37 = vadd.f32 %v1417_v34, %v787_v36 }
 0x39c   : > { %v791_v39 = vmax.f32 %v788_v37, 0.0 }
 0x39e   : > { %v792_v40 = vpack.c.bf16 %v791_v39, %v790_v38 }
 0x3a0   : > { %871 = vmatmul.bf16.vlgmr.msrb.gmra.mxu2 %v792_v40 }
 0x423   : > { %v872_v42 = vpop.f32.mrf.mxu2 }
 0x424   : > { %v873_v43 = vadd.f32 %v1418_v41, %v872_v42 }
 0x426   : > { %v1283_v44 = vmul.f32 -1.442695, %v873_v43 }
 0x428   : > { %1419 = vpow2.f32 %v1283_v44 }
 0x42b   : > { %v874_v45 = vpop.f32.mrf.mxu2 }
 0x42c   : > { %v875_v46 = vadd.f32 %v1418_v41, %v874_v45 }
 0x42e   : > { %v1420_v47 = vpop.eup %1419  ;;  %v1284_v48 = vmul.f32 -1.442695, %v875_v46 }
 0x42f   : > { %v883_v49 = vadd.f32 1.0, %v1420_v47 }
 0x430   : > { %1421 = vpow2.f32 %v1284_v48 }
 0x431   : > { %1423 = vrcp.f32 %v883_v49  ;;  %v896_v55 = vand.u32 2147483648, %v883_v49  ;;  %v894_v57 = vand.u32 2147483647, %v883_v49  ;;  %vm890_vm2 = vweird.f32 %v883_v49 }
 0x433   : > { %v897_v60 = vor.u32 1.1754944e-38, %v896_v55  ;;  %vm895_vm4 = vcmp.eq.f32.partialorder %v894_v57, 8.507059e+37 }
 0x436   : > { %v1422_v50 = vpop.eup %1421 }
 0x437   : > { %v1424_v51 = vpop.eup %1423  ;;  %v884_v52 = vadd.f32 1.0, %v1422_v50 }
 0x438   : > { %v886_v53 = vmul.f32 %v1424_v51, %v883_v49  ;;  %vm891_vm1 = vweird.f32 %v1424_v51 }
 0x439   : > { %1425 = vrcp.f32 %v884_v52  ;;  %vm892_vm3 = vmor %vm890_vm2, %vm891_vm1  ;;  %v911_v2 = vand.u32 2147483648, %v884_v52  ;;  %v909_v5 = vand.u32 2147483647, %v884_v52  ;;  %vm905_vm7 = vweird.f32 %v884_v52 }
 0x43a   : > { %v887_v54 = vsub.f32 1.0, %v886_v53 }
 0x43b   : > { %v912_v7 = vor.u32 1.1754944e-38, %v911_v2  ;;  %vm910_vm9 = vcmp.eq.f32.partialorder %v909_v5, 8.507059e+37 }
 0x43c   : > { %v888_v56 = vmul.f32 %v1424_v51, %v887_v54 }
 0x43e   : > { %v889_v58 = vadd.f32 %v1424_v51, %v888_v56 }
 0x43f   : > { %v1426_v59 = vpop.eup %1425 }
 0x440   : > { %v893_v61 = vsel %vm892_vm3, %v1424_v51, %v889_v58  ;;  %v901_v62 = vmul.f32 %v1426_v59, %v884_v52  ;;  %vm906_vm6 = vweird.f32 %v1426_v59 }
 0x441   : > { %v898_v63 = vsel %vm895_vm4, %v897_v60, %v893_v61  ;;  %vm907_vm8 = vmor %vm905_vm7, %vm906_vm6 }
 0x442   : > { %v915_v0 = vmul.f32 1.002, %v898_v63  ;;  %v902_v1 = vsub.f32 1.0, %v901_v62 }
 0x444   : > { %v1285_v3 = vadd.f32 -0.001, %v915_v0  ;;  %v903_v4 = vmul.f32 %v1426_v59, %v902_v1 }
 0x446   : > { %920 = vst.msk [vmem:[%s261_s5] sm:$0xff] %vm919_vm5, %v1285_v3  ;;  %v904_v6 = vadd.f32 %v1426_v59, %v903_v4 }
 0x448   : > { %v908_v8 = vsel %vm907_vm8, %v1426_v59, %v904_v6 }
 0x449   : > { %v913_v9 = vsel %vm910_vm9, %v912_v7, %v908_v8 }
 0x44a   : > { %v916_v10 = vmul.f32 1.002, %v913_v9 }
 0x44c   : > { %v1286_v11 = vadd.f32 -0.001, %v916_v10 }
 0x44e   : > { %921 = vst.msk [vmem:[%s261_s5 + $0x8] sm:$0xff] %vm919_vm5, %v1286_v11 }
 0x44f PF: > { %p16_p4 = scmp.ge.s32.totalorder %s1639_s11, 4   ;;  %s1723_s15 = smov %s1547_s16 }
 0x450   : > { %s1724_s16 = smov %s1551_s17  ;;  %s1725_s17 = smov %s1648_s14 }
 0x451   : > { %s1726_s18 = smov %s1639_s11  ;;  %18 = sbr.rel (!%p16_p4) target bundleno = 4 (0x4), region = 104 }
 0x456   :  { %961 = vsyncpa [#allocation3], 1 }
 0x457   :  { %963 = vsyncpa [#allocation3 + $0x1], 1 }
 0x458   :  { %964 = vsyncpa [#allocation5], 1 }

</bundles_post_ra>
